<compile_context>
chip_gen: v7x
topology: tpu7x:2x2x1
jax: 0.10.0
libtpu: 0.0.40
codegen_flags: <defaults>
</compile_context>

<pallas_src>
import functools

import jax
import jax.numpy as jnp
from jax.experimental import pallas as pl
from jax.experimental.pallas import tpu as pltpu


# Conservative block-working-set budget that fits every generation once
# vmem_limit_bytes is raised accordingly (v5e/v6e: 128 MiB phys, v7x: 64 MiB).
_VMEM_BUDGET_BYTES = 28 * 1024 * 1024


def _pick_tb(batch, per_sample_bytes, const_bytes,
             vmem_budget=_VMEM_BUDGET_BYTES):
    """Largest samples-per-step TB whose double-buffered working set fits the
    VMEM budget, while keeping grid = cdiv(B, TB) >= 2 whenever B >= 2 so both
    v7x TensorCores receive work under dimension_semantics=("parallel",)."""
    max_tb = batch if batch < 2 else -(-batch // 2)        # ceil(B/2)
    avail = max(vmem_budget - const_bytes, per_sample_bytes)
    return int(max(1, min(max_tb, avail // per_sample_bytes)))


def _patch_embed_kernel(x_ref, w_ref, b_ref, g_ref, beta_ref, o_ref, *,
                        inv_n, eps):
    # x_ref:    (TB, P, K)  bf16 patch matrices
    # w_ref:    (K, E)      bf16 conv weight as matmul RHS
    # b_ref:    (1, E)      f32 conv bias
    # g_ref:    (P, E)      f32 LayerNorm gamma
    # beta_ref: (P, E)      f32 LayerNorm beta
    # o_ref:    (TB, P, E)  output
    tb, p, k = x_ref.shape
    e = w_ref.shape[1]

    # One MXU matmul per grid step: (TB*P, K) x (K, E) with f32 accumulation.
    # P is 16-aligned in the test / typical shapes, so collapsing (TB, P) is a
    # layout-preserving (free) reshape for the bf16 LHS.
    # TODO(synk): for P % 16 != 0 fall back to per-sample (P,K)x(K,E) matmuls
    # to avoid a VMEM relayout of the LHS before the matmul.
    x2d = x_ref[...].reshape(tb * p, k)
    y = jnp.dot(x2d, w_ref[...], preferred_element_type=jnp.float32)
    y = y.reshape(tb, p, e) + b_ref[...]               # conv bias (1, E)

    # Per-sample LayerNorm over the whole (P, E) slab, single-pass statistics.
    # The axis=-1 reduces are the only full-slab sweeps; the follow-up axis=1
    # reduces touch a (TB, P, 1) column and are negligible.
    # TODO(synk): use a shifted single-pass variance if downstream training is
    # sensitive to E[y^2]-mean^2 cancellation at large activation magnitudes.
    s1 = jnp.sum(jnp.sum(y, axis=2, keepdims=True), axis=1, keepdims=True)
    s2 = jnp.sum(jnp.sum(y * y, axis=2, keepdims=True), axis=1, keepdims=True)
    mean = s1 * inv_n
    var = s2 * inv_n - mean * mean
    inv = jax.lax.rsqrt(var + eps)
    o_ref[...] = ((y - mean) * inv * g_ref[...] + beta_ref[...]).astype(o_ref.dtype)


def patch_embedding(x, conv_w, conv_b, ln_gamma, ln_beta, patch_size, *,
                    out_dtype=jnp.float32, compute_dtype=jnp.bfloat16,
                    eps=1e-5):
    """x: (B, C, H, W) NCHW.  conv_w: (E, C, ph, pw) PyTorch layout.
    Returns (B, num_patches, E) in `out_dtype` (set bf16 to halve writeback)."""
    B, C, H, W = x.shape
    E = conv_w.shape[0]
    ph, pw = patch_size
    assert H % ph == 0 and W % pw == 0
    gh, gw = H // ph, W // pw
    P = gh * gw
    K = C * ph * pw

    # --- im2col glue (plain JAX): a single transpose pass with the bf16 cast
    # fused into it; no padding, no extra HBM round-trips.
    # TODO(synk): pull the im2col into the kernel (strided DMAs over raw image
    # rows with memory_space=pl.ANY, or a (ph,pw) reduction grid axis) to drop
    # this last HBM copy as well.
    patches = x.reshape(B, C, gh, ph, gw, pw)
    patches = jnp.transpose(patches, (0, 2, 4, 1, 3, 5)).astype(compute_dtype)
    patches = patches.reshape(B, P, K)

    w_mat = conv_w.reshape(E, K).T.astype(compute_dtype)      # (K, E)
    b_mat = conv_b.reshape(1, E).astype(jnp.float32)          # (1, E)
    g_mat = ln_gamma.astype(jnp.float32)                      # (P, E)
    be_mat = ln_beta.astype(jnp.float32)                      # (P, E)

    in_b = jnp.dtype(compute_dtype).itemsize
    out_b = jnp.dtype(out_dtype).itemsize
    # Double-buffered bytes per sample and for the grid-constant operands.
    per_sample = 2 * (P * K * in_b + P * E * out_b)
    const_bytes = 2 * (K * E * in_b + E * 4 + 2 * P * E * 4)
    # TODO(synk): pipeline_mode=pl.Buffered(1) on the constant operands would
    # halve const_bytes (useful v7x VMEM headroom) once verified on-target.

    TB = _pick_tb(B, per_sample, const_bytes)
    grid = (pl.cdiv(B, TB),)

    vmem_need = TB * per_sample + const_bytes + (2 << 20)
    vmem_limit = int(min(max(vmem_need, 16 << 20), 56 << 20))

    flops = 2 * B * P * K * E
    bytes_accessed = (B * P * K * in_b + K * E * in_b + E * 4
                      + 2 * P * E * 4 + B * P * E * out_b)

    kernel = functools.partial(_patch_embed_kernel,
                               inv_n=1.0 / float(P * E), eps=eps)

    return pl.pallas_call(
        kernel,
        out_shape=jax.ShapeDtypeStruct((B, P, E), out_dtype),
        grid_spec=pltpu.PrefetchScalarGridSpec(
            num_scalar_prefetch=0,
            grid=grid,
            in_specs=[
                pl.BlockSpec((TB, P, K), lambda b: (b, 0, 0)),
                pl.BlockSpec((K, E), lambda b: (0, 0)),
                pl.BlockSpec((1, E), lambda b: (0, 0)),
                pl.BlockSpec((P, E), lambda b: (0, 0)),
                pl.BlockSpec((P, E), lambda b: (0, 0)),
            ],
            out_specs=pl.BlockSpec((TB, P, E), lambda b: (b, 0, 0)),
        ),
        compiler_params=pltpu.CompilerParams(
            dimension_semantics=("parallel",),
            vmem_limit_bytes=vmem_limit),
        cost_estimate=pl.CostEstimate(
            flops=flops, transcendentals=0, bytes_accessed=bytes_accessed),
    )(patches, w_mat, b_mat, g_mat, be_mat)


def _reference(x, conv_w, conv_b, ln_gamma, ln_beta, patch_size):
    """Pure-JAX reference mirroring the PyTorch forward (bf16 matmul inputs,
    f32 accumulation, like the kernel)."""
    B, C, H, W = x.shape
    E = conv_w.shape[0]
    ph, pw = patch_size
    gh, gw = H // ph, W // pw
    P = gh * gw
    patches = x.reshape(B, C, gh, ph, gw, pw)
    patches = jnp.transpose(patches, (0, 2, 4, 1, 3, 5)).reshape(B, P, C * ph * pw)
    y = jnp.dot(patches.astype(jnp.bfloat16),
                conv_w.reshape(E, -1).T.astype(jnp.bfloat16),
                preferred_element_type=jnp.float32) + conv_b
    mean = jnp.mean(y, axis=(1, 2), keepdims=True)
    var = jnp.var(y, axis=(1, 2), keepdims=True)
    return (y - mean) * jax.lax.rsqrt(var + 1e-5) * ln_gamma + ln_beta


if __name__ == "__main__":
    # Small, consistent shapes: image 16x16, patch 4x4, C=4, E=32 -> P=16, K=64
    B, C, H, W = 2, 4, 16, 16
    ph = pw = 4
    E = 32
    P = (H // ph) * (W // pw)
    K = C * ph * pw

    key = jax.random.PRNGKey(0)
    kx, kw, kb, kg, kbe = jax.random.split(key, 5)
    x = jax.random.normal(kx, (B, C, H, W), dtype=jnp.float32)
    conv_w = jax.random.normal(kw, (E, C, ph, pw), dtype=jnp.float32) * 0.02
    conv_b = jax.random.normal(kb, (E,), dtype=jnp.float32) * 0.02
    # LayerNorm params (PyTorch default is ones/zeros; perturb slightly)
    ln_gamma = jnp.ones((P, E), jnp.float32) + 0.01 * jax.random.normal(kg, (P, E))
    ln_beta = 0.01 * jax.random.normal(kbe, (P, E), dtype=jnp.float32)

    out = patch_embedding(x, conv_w, conv_b, ln_gamma, ln_beta, (ph, pw))
    out = jax.block_until_ready(out)

    ref = _reference(x, conv_w, conv_b, ln_gamma, ln_beta, (ph, pw))
    assert out.shape == (B, P, E)
    assert jnp.allclose(out, ref, atol=1e-3, rtol=1e-3), (
        float(jnp.max(jnp.abs(out - ref))))
    print("KERNEL_OK")
</pallas_src>

<mosaic_0001>
module attributes {stable_mosaic.version = 11 : i64} {
  func.func @_patch_embed_kernel(%arg0: i32, %arg1: memref<1x16x64xbf16, #tpu.memory_space<vmem>>, %arg2: memref<64x32xbf16, #tpu.memory_space<vmem>>, %arg3: memref<1x32xf32, #tpu.memory_space<vmem>>, %arg4: memref<16x32xf32, #tpu.memory_space<vmem>>, %arg5: memref<16x32xf32, #tpu.memory_space<vmem>>, %arg6: memref<1x16x32xf32, #tpu.memory_space<vmem>>) attributes {dimension_semantics = [#tpu.dimension_semantics<parallel>], iteration_bounds = array<i64: 2>, scalar_prefetch = 0 : i64, scratch_operands = 0 : i64, tpu.core_type = #tpu.core_type<tc>, window_params = [{transform_indices = @transform_0, window_bounds = array<i64: 1, 16, 64>}, {pipeline_mode = #tpu.pipeline_mode<synchronous>, transform_indices = @transform_1, window_bounds = array<i64: 64, 32>}, {pipeline_mode = #tpu.pipeline_mode<synchronous>, transform_indices = @transform_2, window_bounds = array<i64: 1, 32>}, {pipeline_mode = #tpu.pipeline_mode<synchronous>, transform_indices = @transform_3, window_bounds = array<i64: 16, 32>}, {pipeline_mode = #tpu.pipeline_mode<synchronous>, transform_indices = @transform_4, window_bounds = array<i64: 16, 32>}, {transform_indices = @transform_5, window_bounds = array<i64: 1, 16, 32>}]} {
    %c0 = arith.constant 0 : index
    %c0_0 = arith.constant 0 : index
    %c0_1 = arith.constant 0 : index
    %0 = vector.load %arg1[%c0, %c0_0, %c0_1] : memref<1x16x64xbf16, #tpu.memory_space<vmem>>, vector<1x16x64xbf16>
    %1 = vector.shape_cast %0 : vector<1x16x64xbf16> to vector<16x64xbf16>
    %c0_2 = arith.constant 0 : index
    %c0_3 = arith.constant 0 : index
    %2 = vector.load %arg2[%c0_2, %c0_3] : memref<64x32xbf16, #tpu.memory_space<vmem>>, vector<64x32xbf16>
    %cst = arith.constant dense<0.000000e+00> : vector<16x32xf32>
    %3 = tpu.matmul %1, %2, %cst {dimension_numbers = #tpu.dot_dimension_numbers<[1], [0], [0], [1], [0, 0, 1, 1], [], []>} : vector<16x64xbf16>, vector<64x32xbf16>, vector<16x32xf32> -> vector<16x32xf32>
    %4 = vector.shape_cast %3 : vector<16x32xf32> to vector<1x16x32xf32>
    %c0_4 = arith.constant 0 : index
    %c0_5 = arith.constant 0 : index
    %5 = vector.load %arg3[%c0_4, %c0_5] : memref<1x32xf32, #tpu.memory_space<vmem>>, vector<1x32xf32>
    %6 = vector.shape_cast %5 : vector<1x32xf32> to vector<1x1x32xf32>
    %7 = vector.broadcast %6 : vector<1x1x32xf32> to vector<1x16x32xf32>
    %8 = arith.addf %4, %7 : vector<1x16x32xf32>
    %cst_6 = arith.constant dense<0.000000e+00> : vector<1x16xf32>
    %9 = vector.multi_reduction <add>, %8, %cst_6 [2] : vector<1x16x32xf32> to vector<1x16xf32>
    %10 = vector.shape_cast %9 : vector<1x16xf32> to vector<1x16x1xf32>
    %cst_7 = arith.constant dense<0.000000e+00> : vector<1x1xf32>
    %11 = vector.multi_reduction <add>, %10, %cst_7 [1] : vector<1x16x1xf32> to vector<1x1xf32>
    %12 = vector.shape_cast %11 : vector<1x1xf32> to vector<1x1x1xf32>
    %13 = arith.mulf %8, %8 : vector<1x16x32xf32>
    %cst_8 = arith.constant dense<0.000000e+00> : vector<1x16xf32>
    %14 = vector.multi_reduction <add>, %13, %cst_8 [2] : vector<1x16x32xf32> to vector<1x16xf32>
    %15 = vector.shape_cast %14 : vector<1x16xf32> to vector<1x16x1xf32>
    %cst_9 = arith.constant dense<0.000000e+00> : vector<1x1xf32>
    %16 = vector.multi_reduction <add>, %15, %cst_9 [1] : vector<1x16x1xf32> to vector<1x1xf32>
    %17 = vector.shape_cast %16 : vector<1x1xf32> to vector<1x1x1xf32>
    %cst_10 = arith.constant 0.001953125 : f32
    %18 = vector.broadcast %cst_10 : f32 to vector<1x1x1xf32>
    %19 = arith.mulf %12, %18 : vector<1x1x1xf32>
    %cst_11 = arith.constant 0.001953125 : f32
    %20 = vector.broadcast %cst_11 : f32 to vector<1x1x1xf32>
    %21 = arith.mulf %17, %20 : vector<1x1x1xf32>
    %22 = arith.mulf %19, %19 : vector<1x1x1xf32>
    %23 = arith.subf %21, %22 : vector<1x1x1xf32>
    %cst_12 = arith.constant 9.99999974E-6 : f32
    %24 = vector.broadcast %cst_12 : f32 to vector<1x1x1xf32>
    %25 = arith.addf %23, %24 : vector<1x1x1xf32>
    %26 = math.rsqrt %25 : vector<1x1x1xf32>
    %27 = vector.broadcast %19 : vector<1x1x1xf32> to vector<1x16x32xf32>
    %28 = arith.subf %8, %27 : vector<1x16x32xf32>
    %29 = vector.broadcast %26 : vector<1x1x1xf32> to vector<1x16x32xf32>
    %30 = arith.mulf %28, %29 : vector<1x16x32xf32>
    %c0_13 = arith.constant 0 : index
    %c0_14 = arith.constant 0 : index
    %31 = vector.load %arg4[%c0_13, %c0_14] : memref<16x32xf32, #tpu.memory_space<vmem>>, vector<16x32xf32>
    %32 = vector.shape_cast %31 : vector<16x32xf32> to vector<1x16x32xf32>
    %33 = arith.mulf %30, %32 : vector<1x16x32xf32>
    %c0_15 = arith.constant 0 : index
    %c0_16 = arith.constant 0 : index
    %34 = vector.load %arg5[%c0_15, %c0_16] : memref<16x32xf32, #tpu.memory_space<vmem>>, vector<16x32xf32>
    %35 = vector.shape_cast %34 : vector<16x32xf32> to vector<1x16x32xf32>
    %36 = arith.addf %33, %35 : vector<1x16x32xf32>
    %c0_17 = arith.constant 0 : index
    %c0_18 = arith.constant 0 : index
    %c0_19 = arith.constant 0 : index
    %37 = vector.load %arg6[%c0_17, %c0_18, %c0_19] : memref<1x16x32xf32, #tpu.memory_space<vmem>>, vector<1x16x32xf32>
    tpu.vector_store %arg6[%c0_17, %c0_18, %c0_19], %36 {strides = array<i32>} : memref<1x16x32xf32, #tpu.memory_space<vmem>>, vector<1x16x32xf32>,
    return
  }
  func.func @transform_0(%arg0: i32) -> (i32, i32, i32) {
    %c0_i32 = arith.constant 0 : i32
    %c0_i32_0 = arith.constant 0 : i32
    %c0_i32_1 = arith.constant 0 : i32
    return %arg0, %c0_i32, %c0_i32_0 : i32, i32, i32
  }
  func.func @transform_1(%arg0: i32) -> (i32, i32) {
    %c0_i32 = arith.constant 0 : i32
    %c0_i32_0 = arith.constant 0 : i32
    %c0_i32_1 = arith.constant 0 : i32
    return %c0_i32, %c0_i32_0 : i32, i32
  }
  func.func @transform_2(%arg0: i32) -> (i32, i32) {
    %c0_i32 = arith.constant 0 : i32
    %c0_i32_0 = arith.constant 0 : i32
    %c0_i32_1 = arith.constant 0 : i32
    return %c0_i32, %c0_i32_0 : i32, i32
  }
  func.func @transform_3(%arg0: i32) -> (i32, i32) {
    %c0_i32 = arith.constant 0 : i32
    %c0_i32_0 = arith.constant 0 : i32
    %c0_i32_1 = arith.constant 0 : i32
    return %c0_i32, %c0_i32_0 : i32, i32
  }
  func.func @transform_4(%arg0: i32) -> (i32, i32) {
    %c0_i32 = arith.constant 0 : i32
    %c0_i32_0 = arith.constant 0 : i32
    %c0_i32_1 = arith.constant 0 : i32
    return %c0_i32, %c0_i32_0 : i32, i32
  }
  func.func @transform_5(%arg0: i32) -> (i32, i32, i32) {
    %c0_i32 = arith.constant 0 : i32
    %c0_i32_0 = arith.constant 0 : i32
    %c0_i32_1 = arith.constant 0 : i32
    return %arg0, %c0_i32, %c0_i32_0 : i32, i32, i32
  }
}

</mosaic_0001>

<bundles_post_ra>
// kernel: tpu_custom_call.1
= control target key start
LH: loop header
LB: loop body
LE: loop exit
PB: predicated region body
PF: predicated region fallthrough
CT: control target
= control target key end

     0   :  { %10 = vsyncpa [#allocation3], 0  ;;  %s765_s0 = inlined_call_operand.vmem [shape: bf16[2,16,64], index: 0, kind: input, shape index: {}]   ;;  %s766_s1 = inlined_call_operand.vmem [shape: bf16[64,32], index: 1, kind: input, shape index: {}]   ;;  %s767_s2 = inlined_call_operand.vmem [shape: f32[1,32], index: 2, kind: input, shape index: {}]   ;;  %s768_s3 = inlined_call_operand.vmem [shape: f32[16,32], index: 3, kind: input, shape index: {}]   ;;  %s769_s4 = inlined_call_operand.vmem [shape: f32[16,32], index: 4, kind: input, shape index: {}]   ;;  %s770_s5 = inlined_call_operand.hbm [shape: f32[2,16,32], index: 5, kind: output, shape index: {}]  }
   0x1   :  { %12 = vsyncpa [#allocation3 + $0x1], 0  ;;  %s629_s18 = smov 0   ;;  %s631_s19 = smov 0  }
   0x2   :  { %s633_s20 = smov 0   ;;  %s635_s21 = smov 0  }
   0x3 LB: > { %s650_s22 = sadd.s32 4294967295, %s592_s21   ;;  %s442_s23 = sadd.s32 4294967294, %s592_s21   ;;  %s592_s21 = sphi %s635_s21, %s776_s21   ;;  %s588_s20 = sphi %s633_s20, %s775_s20   ;;  %s584_s19 = sphi %s631_s19, %s774_s19   ;;  %s580_s18 = sphi %s629_s18, %s773_s18  }
   0x4   : > { %s654_s24 = sadd.s32 1, %s592_s21   ;;  %s135_s25 = sadd.s32 1, %s588_s20 }
   0x5   : > { %s132_s26 = ssub.s32 %s592_s21, %s654_s24  ;;  %p145_p0 = scmp.ne.s32.totalorder %s588_s20, %s584_s19 }
   0x6   : > { %p133_p1 = scmp.eq.s32.totalorder %s132_s26, 0  ;;  %p146_p2 = scmp.eq.s32.totalorder %s650_s22, 1 }
   0x7   : > { %p151_p3 = scmp.ne.s32.totalorder %s584_s19, %s580_s18  ;;  %p152_p4 = scmp.eq.s32.totalorder %s442_s23, 1 }
   0x8   : > { %s665_s27 = scalar_select %p133_p1, %s588_s20, %s135_s25  }
   0x9   : > { %p667_p5 = por %p146_p2, %p145_p0  ;;  %p671_p6 = por %p152_p4, %p151_p3 }
   0xa   : > { %p445_p7 = scmp.ge.s32.totalorder %s592_s21, 1  ;;  %p190_p8 = scmp.lt.s32.totalorder %s592_s21, 3 }
   0xc   : > { %p191_p9 = pnand %p445_p7, %p190_p8 }
   0xd   : > { %v523_v0 = vld [vmem:[%s766_s1] sm:$0xff] (!%p191_p9)   ;;  %v594_v1 = vmov (!%p191_p9), 0.0   ;;  %v524_v2 = vld [vmem:[%s766_s1 + $0x8] sm:$0xff] (!%p191_p9)   ;;  %vm595_vm0 = vmmov (!%p191_p9), 0   ;;  %p218_p10 = scmp.lt.s32.totalorder (!%p191_p9), %s650_s22, 1  ;;  %v525_v3 = vld [vmem:[%s766_s1 + $0x10] sm:$0xff] (!%p191_p9)  }
   0xe   : > { %194 = sbr.rel (%p191_p9) target bundleno = 445 (0x1bd), region = 40  ;;  %468 = vmatprep.subr.bf16.mxu0 (!%p191_p9), %v594_v1  ;;  %476 = vmatprep.mubr.msk.bf16.mxu0 (!%p191_p9), %vm595_vm0, %v594_v1  ;;  %v526_v4 = vld [vmem:[%s766_s1 + $0x18] sm:$0xff] (!%p191_p9)   ;;  %vm263_vm1 = vcmask (!%p191_p9), 523264   ;;  %v455_v6 = vld [vmem:[%s767_s2] ss:$0 sm:$0xff] (!%p191_p9)  ;;  %vm317_vm2 = vcmask (!%p191_p9), 261120  }
   0xf   : > { %469 = vmatpush3.bf16.msra.mxu0 (!%p191_p9), %v523_v0  ;;  %s215_s26 = sand.u32 (!%p191_p9), 1, %s584_s19   ;;  %v356_v45 = vld [vmem:[%s768_s3] sm:$0xff] (!%p191_p9)  ;;  %v357_v46 = vld [vmem:[%s768_s3 + $0x8] sm:$0xff] (!%p191_p9)  ;;  %s462_s10 = sshll.u32 (!%p191_p9), %s650_s22, 8 }
  0x10   : > { %470 = vmatprep.subr.bf16.mxu0 (!%p191_p9), %v594_v1  ;;  %s446_s30 = sshll.u32 (!%p191_p9), %s215_s26, 4  ;;  %v360_v49 = vld [vmem:[%s769_s4] sm:$0xff] (!%p191_p9)  ;;  %v361_v50 = vld [vmem:[%s769_s4 + $0x8] sm:$0xff] (!%p191_p9)  ;;  %s718_s25 = scalar_lea.hbm (!%p191_p9), %s770_s5, %s462_s10 }
  0x11   : > { %s217_s11 = scalar_lea.vmem (!%p191_p9), [#allocation2], %s446_s30  ;;  %s596_s6 = smov (!%p191_p9), [#allocation2]  }
  0x12   : > { %s534_s7 = sshll.u32 (!%p191_p9), %s596_s6, 4  ;;  %s535_s7 = int_to_ptr.vmem [resolvable:$false] %s534_s7 }
  0x13   : > { %471 = vmatpush3.bf16.msra.mxu0 (!%p191_p9), %v524_v2  ;;  %s536_s8 = scalar_lea.vmem (!%p191_p9), %s535_s7, 512 }
  0x14   : > { %472 = vmatprep.subr.bf16.mxu0 (!%p191_p9), %v594_v1 }
  0x15   : > { %s219_s9 = scalar_select %p218_p10, %s650_s22, 1 }
  0x16   : > { %s724_s22 = scalar_lea.sflag [#allocation3], %s215_s26 }
  0x17   : > { %s461_s12 = sshll.u32 %s219_s9, 3  ;;  %473 = vmatpush3.bf16.msra.mxu0 %v525_v3 }
  0x18   : > { %s222_s15 = scalar_lea.vmem %s765_s0, %s461_s12  ;;  %474 = vmatprep.subr.bf16.mxu0 %v594_v1  ;;  %s380_s12 = sshll.u32 %s217_s11, 4  ;;  %s720_s12 = int_to_ptr.vmem [resolvable:$true] %s380_s12 }
  0x19   : > { %v527_v5 = vld [vmem:[%s222_s15] sm:$0xff]   ;;  %s530_s30 = scalar_lea.vmem %s720_s12, 256  ;;  %p537_p0 = scmp.lt.s32.totalorder %s720_s12, %s535_s7 }
  0x1a   : > { %p531_p11 = scmp.ne.s32.totalorder %s720_s12, %s530_s30  ;;  %p538_p1 = scmp.lt.s32.totalorder %s536_s8, %s530_s30 }
  0x1b   : > { %475 = vmatpush3.bf16.msra.mxu0 %v526_v4 }
  0x1c   : > { %p532_p12 = pnand %p531_p11, %p667_p5  ;;  %p539_p2 = por %p538_p1, %p537_p0 }
  0x1e   : > { %477 = vmatmul.mubr.msk.bf16.vlgmr.msra.gmra.mrb[0].mxu0 %vm263_vm1, %v527_v5  ;;  %p533_p13 = pneg %p532_p12 }
  0x20   : > { %p540_p3 = pnand %p539_p2, %p533_p13 }
  0xf1   : > { %v301_v7 = vpop.f32.mrb[0].mxu0 }
  0xf2   : > { %v315_v8 = vadd.f32 %v455_v6, %v301_v7  ;;  %v478_v9 = vpop.f32.mrb[1].mxu0 }
  0xf3   : > { %v304_v10 = vpop.f32.mrb[2].mxu0 }
  0xf4   : > { %v316_v11 = vadd.f32 %v455_v6, %v304_v10  ;;  %v479_v12 = vpop.f32.mrb[3].mxu0  ;;  %v318_v13 = vsel %vm317_vm2, %v315_v8, 0.0  ;;  %v331_v14 = vmul.f32 %v315_v8, %v315_v8 }
  0xf5   : > { %319 = vadd.xlane.f32.xlu0 %v318_v13 }
  0xf6   : > { %v333_v15 = vsel %vm317_vm2, %v331_v14, 0.0  ;;  %v332_v16 = vmul.f32 %v316_v11, %v316_v11  ;;  %v321_v17 = vsel %vm317_vm2, %v316_v11, 0.0 }
  0xf7   : > { %334 = vadd.xlane.f32.xlu1 %v333_v15 }
  0xf8   : > { %v336_v18 = vsel %vm317_vm2, %v332_v16, 0.0 }
  0xf9   : > { %322 = vadd.xlane.f32.xlu0 %v321_v17 }
  0xfb   : > { %337 = vadd.xlane.f32.xlu1 %v336_v18 }
 0x182   : > { %v320_v19 = vpop.xlane.xlu0 %319 }
 0x184   : > { %v335_v20 = vpop.xlane.xlu1 %334 }
 0x186   : > { %v323_v21 = vpop.xlane.xlu0 %322 }
 0x187   : > { %v324_v22 = vadd.f32 %v323_v21, %v320_v19 }
 0x188   : > { %v338_v23 = vpop.xlane.xlu1 %337 }
 0x189   : > { %v325_v24 = vrot.slane %v324_v22, 4  ;;  %v339_v25 = vadd.f32 %v338_v23, %v335_v20 }
 0x18b   : > { %v326_v26 = vadd.f32 %v325_v24, %v324_v22  ;;  %v340_v27 = vrot.slane %v339_v25, 4 }
 0x18d   : > { %v327_v28 = vrot.slane %v326_v26, 2  ;;  %v341_v29 = vadd.f32 %v340_v27, %v339_v25 }
 0x18f   : > { %v328_v30 = vadd.f32 %v327_v28, %v326_v26  ;;  %v342_v31 = vrot.slane %v341_v29, 2 }
 0x191   : > { %v329_v32 = vrot.slane %v328_v30, 1  ;;  %v343_v33 = vadd.f32 %v342_v31, %v341_v29 }
 0x193   : > { %v330_v34 = vadd.f32 %v329_v32, %v328_v30  ;;  %v344_v35 = vrot.slane %v343_v33, 1 }
 0x195   : > { %v346_v36 = vmul.f32 0.001953125, %v330_v34  ;;  %v345_v37 = vadd.f32 %v344_v35, %v343_v33 }
 0x197   : > { %v347_v38 = vmul.f32 0.001953125, %v345_v37  ;;  %v348_v39 = vmul.f32 %v346_v36, %v346_v36  ;;  %v352_v42 = vsub.f32 %v315_v8, %v346_v36  ;;  %v353_v43 = vsub.f32 %v316_v11, %v346_v36 }
 0x199   : > { %v349_v40 = vsub.f32 %v347_v38, %v348_v39 }
 0x19b   : > { %v350_v41 = vadd.f32 1e-05, %v349_v40 }
 0x19d   : > { %528 = vrsqrt.f32 %v350_v41 }
 0x1a7   : > { %v529_v44 = vpop.eup %528 }
 0x1a8   : > { %v354_v47 = vmul.f32 %v529_v44, %v352_v42  ;;  %v355_v48 = vmul.f32 %v529_v44, %v353_v43 }
 0x1aa   : > { %v358_v51 = vmul.f32 %v356_v45, %v354_v47  ;;  %v359_v52 = vmul.f32 %v357_v46, %v355_v48 }
 0x1ac   : > { %v362_v53 = vadd.f32 %v360_v49, %v358_v51  ;;  %v363_v54 = vadd.f32 %v361_v50, %v359_v52 }
 0x1ae   : > { %364 = vst.msk [vmem:[%s217_s11] sm:$0xff] %vm317_vm2, %v362_v53  ;;  %365 = vst.msk [vmem:[%s217_s11 + $0x8] sm:$0xff] %vm317_vm2, %v363_v54 }
 0x1af   : > { %543 = shalt.err (!%p540_p3)
}
 0x1b0   : > { %s544_s26 = scalar_lea.hbm %s718_s25, 256  ;;  %s548_s11 = scalar_lea.hbm %s770_s5, 512 }
 0x1b1   : > { %p545_p4 = scmp.ne.s32.totalorder %s718_s25, %s544_s26  ;;  %p549_p9 = scmp.lt.u32.totalorder %s718_s25, %s770_s5 }
 0x1b2   : > { %p550_p10 = scmp.lt.u32.totalorder %s548_s11, %s544_s26  ;;  %p552_p12 = scmp.lt.u32.totalorder %s544_s26, %s718_s25 }
 0x1b3   : > { %p546_p7 = pnand %p545_p4, %p667_p5 }
 0x1b4   : > { %p551_p11 = por %p550_p10, %p549_p9 }
 0x1b5   : > { %p547_p8 = pneg %p546_p7 }
 0x1b6   : > { %p553_p13 = por %p552_p12, %p551_p11 }
 0x1b8   : > { %p554_p0 = pnand %p553_p13, %p547_p8 }
 0x1ba   : > { %557 = shalt.err (!%p554_p0)
}
 0x1bb   : > { %s597_s15 = smov 128   ;;  %s598_s16 = smov 8  }
 0x1bc   : > { %480 = dma.vmem_to_hbm [thread:$0]  (%p667_p5), %s720_s12, 256, %s718_s25, %s724_s22, %s597_s15, %s597_s15, %s598_s16  }
 0x1bd PF: > { %p486_p1 = scmp.ge.s32.totalorder %s592_s21, 2  ;;  %s395_s17 = sand.u32 1, %s580_s18  }
 0x1be   : > { %s396_s23 = scalar_lea.sflag [#allocation3], %s395_s17 }
 0x1bf   : > { %p483_p2 = pnand %p486_p1, %p671_p6 }
 0x1c1   : > { %575 = dma.done.wait (!%p483_p2), %s396_s23, 256  }
 0x1c2   : > { %577 = vsyncadd (!%p483_p2), %s396_s23, 4294967040  ;;  %p15_p3 = scmp.ge.s32.totalorder %s654_s24, 4   ;;  %s773_s18 = smov %s584_s19 }
 0x1c3   : > { %s774_s19 = smov %s588_s20  ;;  %s775_s20 = smov %s665_s27 }
 0x1c4   : > { %s776_s21 = smov %s654_s24  ;;  %17 = sbr.rel (!%p15_p3) target bundleno = 3 (0x3), region = 75 }
 0x1cb   :  { %401 = vsyncpa [#allocation3], 1 }
 0x1cc   :  { %403 = vsyncpa [#allocation3 + $0x1], 1 }

</bundles_post_ra>
